<compile_context>
chip_gen: v7x
topology: tpu7x:2x2x1
jax: 0.10.0
libtpu: 0.0.40
codegen_flags: <defaults>
</compile_context>

<pallas_src>
import numpy as np
import jax
import jax.numpy as jnp
from jax.experimental import pallas as pl
from jax.experimental.pallas import tpu as pltpu


def _round_up(x, m):
    return ((x + m - 1) // m) * m


# ---------------------------------------------------------------------------
# Generation-aware VMEM budgeting
# ---------------------------------------------------------------------------
def _vmem_budget_bytes():
    """Half of physical VMEM as the tiling budget (64 MiB on v5e/v6e, 32 MiB on
    v7x's 64 MiB-per-TC), with a conservative fallback if the query fails."""
    try:
        cap = int(pltpu.get_tpu_info().vmem_capacity_bytes)
    except Exception:  # e.g. no TPU info available at trace time
        cap = 64 << 20
    return cap // 2


def _choose_tm(batch, d_in_pad, d_out_pad, x_bytes, out_bytes, budget):
    """Batch tile: multiple of 8 sublanes, as large as the whole (8-rounded)
    batch when it fits the VMEM budget, otherwise halved until it fits.
    Weight and bias are counted double-buffered (Pallas double-buffers every
    input by default, even when the block index never changes)."""
    resident = 2 * (d_in_pad * d_out_pad * 4 + d_out_pad * 4)   # f32 w + b, x2

    def step_bytes(t):  # double-buffered activation + output tiles
        return 2 * t * (d_in_pad * x_bytes + d_out_pad * out_bytes)

    tm = _round_up(max(batch, 1), 8)
    while tm > 8 and step_bytes(tm) + resident > budget:
        tm = max(8, (tm // 2) // 8 * 8)
    return tm


# ---------------------------------------------------------------------------
# Pallas kernel: fused Linear projection + L2 normalize + clip (one modality)
# ---------------------------------------------------------------------------
def _proj_norm_kernel(x_ref, w_ref, b_ref, o_ref):
    # x_ref : [TM, D_in_pad]        f32
    # w_ref : [D_in_pad, D_out_pad] f32 (transposed nn.Linear weight, resident)
    # b_ref : [1, D_out_pad]        f32
    # o_ref : [TM, D_out_pad]       out dtype
    # f32 x f32 with f32 accumulation on the MXU: exact parity with the torch
    # reference (single projection layer -> multi-pass cost is negligible).
    y = jnp.dot(x_ref[...], w_ref[...], preferred_element_type=jnp.float32)
    y = y + b_ref[...]
    # torch.norm(p=2, dim=-1, keepdim=True); padded cols are exactly 0.
    norm = jnp.sqrt(jnp.sum(y * y, axis=-1, keepdims=True))
    z = y / (norm + 1e-7)                      # exact, matches emb.div(norm+eps)
    o_ref[...] = jnp.clip(z, -1000.0, 1000.0).astype(o_ref.dtype)


def proj_l2norm_clip(x, w_pad, b_pad, *, out_dtype=jnp.float32):
    """Fused Linear + L2-normalize + clip for one modality.

    x      : [B, D_in]              f32 activations (clip_emb)
    w_pad  : [D_in_pad, D_out_pad]  zero-padded transposed nn.Linear weight
    b_pad  : [1, D_out_pad]         zero-padded bias
    returns: [B, D_out_pad]         out_dtype
    """
    B, d_in = x.shape
    d_in_pad, d_out_pad = w_pad.shape
    assert d_in_pad % 128 == 0 and d_out_pad % 128 == 0

    # Pad only the feature dim (zero K columns are exact no-ops for the matmul
    # and the norm); cheap and fusable into the encoder epilogue by XLA.
    # The batch dim stays unpadded: the ragged last grid block is masked by
    # Pallas and rows are independent under the per-row L2 norm.
    if d_in != d_in_pad:
        x = jnp.pad(x, ((0, 0), (0, d_in_pad - d_in)))
    x = x.astype(jnp.float32)

    budget = _vmem_budget_bytes()
    out_bytes = jnp.dtype(out_dtype).itemsize
    tm = _choose_tm(B, d_in_pad, d_out_pad, 4, out_bytes, budget)
    grid = (pl.cdiv(B, tm),)

    flops = 2 * B * d_in_pad * d_out_pad
    bytes_accessed = (B * d_in_pad * 4 + d_in_pad * d_out_pad * 4
                      + d_out_pad * 4 + B * d_out_pad * out_bytes)

    return pl.pallas_call(
        _proj_norm_kernel,
        out_shape=jax.ShapeDtypeStruct((B, d_out_pad), out_dtype),
        grid_spec=pl.GridSpec(
            grid=grid,
            in_specs=[
                # activations: new batch tile per grid step
                pl.BlockSpec((tm, d_in_pad), lambda i: (i, 0)),
                # weight / bias: constant block index -> stay VMEM-resident
                pl.BlockSpec((d_in_pad, d_out_pad), lambda i: (0, 0)),
                pl.BlockSpec((1, d_out_pad), lambda i: (0, 0)),
            ],
            out_specs=pl.BlockSpec((tm, d_out_pad), lambda i: (i, 0)),
        ),
        compiler_params=pltpu.CompilerParams(
            dimension_semantics=("parallel",),          # megacore-shardable
            vmem_limit_bytes=int(budget + (8 << 20)),   # matches the TM budget
        ),
        cost_estimate=pl.CostEstimate(
            flops=flops, transcendentals=B, bytes_accessed=bytes_accessed),
    )(x, w_pad, b_pad)


# ---------------------------------------------------------------------------
# AudioTextClip in JAX (encoders are deterministic stand-ins)
# ---------------------------------------------------------------------------
class AudioTextClipJAX:
    def __init__(self, key, wave_len, seq_len, vocab_size,
                 audio_dim, text_dim, shared_dim, out_dtype=jnp.float32):
        ks = jax.random.split(key, 6)
        s = 0.02
        self.audio_dim = audio_dim
        self.text_dim = text_dim
        self.shared_dim = shared_dim
        self.out_dtype = out_dtype          # bf16 halves HBM writeback if OK
        # per-modality lane-dense padded feature dims (multiples of 128)
        self.audio_in_pad = _round_up(audio_dim, 128)
        self.text_in_pad = _round_up(text_dim, 128)
        self.d_out_pad = _round_up(shared_dim, 128)

        # TODO(synk): external audio_encoder / text_encoder modules are opaque
        # in the reference; replaced by deterministic linear / embedding
        # stand-ins that emit a (B, dim) 'clip_emb'.
        self.audio_enc_w = jax.random.normal(ks[0], (wave_len, audio_dim),
                                             jnp.float32) * s
        self.text_embed = jax.random.normal(ks[1], (vocab_size, text_dim),
                                            jnp.float32) * s

        # nn.Linear(audio_dim, shared_dim) / nn.Linear(text_dim, shared_dim):
        # weights stored transposed [D_in, D_out], zero-padded per modality, f32.
        audio_w_t = jax.random.normal(ks[2], (audio_dim, shared_dim),
                                      jnp.float32) * s
        audio_b = jax.random.normal(ks[3], (shared_dim,), jnp.float32) * s
        text_w_t = jax.random.normal(ks[4], (text_dim, shared_dim),
                                     jnp.float32) * s
        text_b = jax.random.normal(ks[5], (shared_dim,), jnp.float32) * s

        self.audio_w_pad = (jnp.zeros((self.audio_in_pad, self.d_out_pad),
                                      jnp.float32)
                            .at[:audio_dim, :shared_dim].set(audio_w_t))
        self.audio_b_pad = (jnp.zeros((1, self.d_out_pad), jnp.float32)
                            .at[0, :shared_dim].set(audio_b))
        self.text_w_pad = (jnp.zeros((self.text_in_pad, self.d_out_pad),
                                     jnp.float32)
                           .at[:text_dim, :shared_dim].set(text_w_t))
        self.text_b_pad = (jnp.zeros((1, self.d_out_pad), jnp.float32)
                           .at[0, :shared_dim].set(text_b))

        # logit_scale = Parameter(ones([]) * log(1/0.07))
        self.logit_scale = jnp.asarray(np.log(1.0 / 0.07), jnp.float32)

    # --- encoder stand-ins (glue, plain JAX) -------------------------------
    def _audio_encoder(self, waveform, wave_length):
        B, T = waveform.shape
        t = jnp.arange(T)[None, :]
        mask = (t < wave_length[:, None]).astype(jnp.float32)
        return (waveform * mask) @ self.audio_enc_w              # (B, audio_dim)

    def _text_encoder(self, input_ids, token_type_ids, attention_mask):
        emb = self.text_embed[input_ids]                         # (B, S, text_dim)
        m = attention_mask.astype(jnp.float32)[..., None]
        pooled = (emb * m).sum(axis=1) / (m.sum(axis=1) + 1e-7)
        return pooled                                            # (B, text_dim)

    # --- projection path (Pallas) -------------------------------------------
    def _project(self, clip_emb, w_pad, b_pad):
        out = proj_l2norm_clip(clip_emb, w_pad, b_pad, out_dtype=self.out_dtype)
        if self.d_out_pad != self.shared_dim:
            # No-op when shared_dim is a multiple of 128 (recommended).
            out = out[:, :self.shared_dim]
        return out

    # --- module semantics ----------------------------------------------------
    def encode_audio(self, waveform, wave_length):
        return self._project(self._audio_encoder(waveform, wave_length),
                             self.audio_w_pad, self.audio_b_pad)

    def encode_text(self, input_ids, token_type_ids, attention_mask):
        return self._project(
            self._text_encoder(input_ids, token_type_ids, attention_mask),
            self.text_w_pad, self.text_b_pad)

    def forward(self, input_dict):
        audio_emb = self.encode_audio(input_dict['waveform'],
                                      input_dict['wave_length'])
        text_emb = self.encode_text(input_dict['input_ids'],
                                    input_dict['token_type_ids'],
                                    input_dict['attention_mask'])
        return {
            'audio_emb': audio_emb,
            'text_emb': text_emb,
            'logit_scale': jnp.exp(self.logit_scale),
        }


# ---------------------------------------------------------------------------
if __name__ == "__main__":
    B = 2
    WAVE_LEN = 16     # waveform samples
    SEQ = 8           # text tokens
    VOCAB = 32
    AUDIO_DIM = 32
    TEXT_DIM = 48
    SHARED_DIM = 128  # multiple of 128 -> lane-dense output, no post-call slice

    key = jax.random.PRNGKey(0)
    k_model, k_wave, k_ids = jax.random.split(key, 3)

    model = AudioTextClipJAX(k_model, WAVE_LEN, SEQ, VOCAB,
                             AUDIO_DIM, TEXT_DIM, SHARED_DIM)

    waveform = jax.random.normal(k_wave, (B, WAVE_LEN), jnp.float32)
    wave_length = jnp.array([WAVE_LEN, WAVE_LEN // 2], jnp.int32)
    input_ids = jax.random.randint(k_ids, (B, SEQ), 0, VOCAB, jnp.int32)
    token_type_ids = jnp.zeros((B, SEQ), jnp.int32)
    attention_mask = jnp.concatenate(
        [jnp.ones((B, SEQ - 2), jnp.int32), jnp.zeros((B, 2), jnp.int32)],
        axis=1)

    input_dict = {
        'waveform': waveform,
        'wave_length': wave_length,
        'input_ids': input_ids,
        'token_type_ids': token_type_ids,
        'attention_mask': attention_mask,
    }

    out = model.forward(input_dict)
    jax.block_until_ready(out)

    assert out['audio_emb'].shape == (B, SHARED_DIM)
    assert out['text_emb'].shape == (B, SHARED_DIM)

    # Pure-JAX f32 reference (same math, same dtype path -> tight tolerances).
    def ref_branch(clip_emb, w_pad, b_pad, d_in):
        w = w_pad[:d_in, :SHARED_DIM]
        b = b_pad[0, :SHARED_DIM]
        y = clip_emb @ w + b
        n = jnp.linalg.norm(y, axis=-1, keepdims=True)
        return jnp.clip(y / (n + 1e-7), -1000.0, 1000.0)

    audio_ref = ref_branch(model._audio_encoder(waveform, wave_length),
                           model.audio_w_pad, model.audio_b_pad, AUDIO_DIM)
    text_ref = ref_branch(model._text_encoder(input_ids, token_type_ids,
                                              attention_mask),
                          model.text_w_pad, model.text_b_pad, TEXT_DIM)
    np.testing.assert_allclose(np.asarray(out['audio_emb']),
                               np.asarray(audio_ref), rtol=1e-4, atol=1e-4)
    np.testing.assert_allclose(np.asarray(out['text_emb']),
                               np.asarray(text_ref), rtol=1e-4, atol=1e-4)
    # embeddings are L2-normalized
    assert np.allclose(np.linalg.norm(np.asarray(out['audio_emb']), axis=-1),
                       1.0, atol=1e-3)
    assert np.allclose(np.linalg.norm(np.asarray(out['text_emb']), axis=-1),
                       1.0, atol=1e-3)
    assert np.allclose(np.asarray(out['logit_scale']), 1.0 / 0.07, rtol=1e-5)

    print("KERNEL_OK")
</pallas_src>

<mosaic_0001>
module attributes {stable_mosaic.version = 11 : i64} {
  func.func @_proj_norm_kernel(%arg0: i32, %arg1: memref<8x128xf32, #tpu.memory_space<vmem>>, %arg2: memref<128x128xf32, #tpu.memory_space<vmem>>, %arg3: memref<1x128xf32, #tpu.memory_space<vmem>>, %arg4: memref<8x128xf32, #tpu.memory_space<vmem>>) attributes {dimension_semantics = [#tpu.dimension_semantics<parallel>], iteration_bounds = array<i64: 1>, scalar_prefetch = 0 : i64, scratch_operands = 0 : i64, tpu.core_type = #tpu.core_type<tc>, window_params = [{transform_indices = @transform_0, window_bounds = array<i64: 8, 128>}, {pipeline_mode = #tpu.pipeline_mode<synchronous>, transform_indices = @transform_1, window_bounds = array<i64: 128, 128>}, {pipeline_mode = #tpu.pipeline_mode<synchronous>, transform_indices = @transform_2, window_bounds = array<i64: 1, 128>}, {transform_indices = @transform_3, window_bounds = array<i64: 8, 128>}]} {
    %c0 = arith.constant 0 : index
    %c0_0 = arith.constant 0 : index
    %0 = vector.load %arg1[%c0, %c0_0] : memref<8x128xf32, #tpu.memory_space<vmem>>, vector<8x128xf32>
    %c0_1 = arith.constant 0 : index
    %c0_2 = arith.constant 0 : index
    %1 = vector.load %arg2[%c0_1, %c0_2] : memref<128x128xf32, #tpu.memory_space<vmem>>, vector<128x128xf32>
    %cst = arith.constant dense<0.000000e+00> : vector<8x128xf32>
    %2 = tpu.matmul %0, %1, %cst {dimension_numbers = #tpu.dot_dimension_numbers<[1], [0], [0], [1], [0, 0, 1, 1], [], []>} : vector<8x128xf32>, vector<128x128xf32>, vector<8x128xf32> -> vector<8x128xf32>
    %c0_3 = arith.constant 0 : index
    %c0_4 = arith.constant 0 : index
    %3 = vector.load %arg3[%c0_3, %c0_4] : memref<1x128xf32, #tpu.memory_space<vmem>>, vector<1x128xf32>
    %4 = vector.broadcast %3 : vector<1x128xf32> to vector<8x128xf32>
    %5 = arith.addf %2, %4 : vector<8x128xf32>
    %6 = arith.mulf %5, %5 : vector<8x128xf32>
    %cst_5 = arith.constant dense<0.000000e+00> : vector<8xf32>
    %7 = vector.multi_reduction <add>, %6, %cst_5 [1] : vector<8x128xf32> to vector<8xf32>
    %8 = vector.shape_cast %7 : vector<8xf32> to vector<8x1xf32>
    %9 = math.sqrt %8 : vector<8x1xf32>
    %cst_6 = arith.constant 1.000000e-07 : f32
    %10 = vector.broadcast %cst_6 : f32 to vector<8x1xf32>
    %11 = arith.addf %9, %10 : vector<8x1xf32>
    %12 = vector.broadcast %11 : vector<8x1xf32> to vector<8x128xf32>
    %13 = arith.divf %5, %12 : vector<8x128xf32>
    %cst_7 = arith.constant -1.000000e+03 : f32
    %cst_8 = arith.constant 1.000000e+03 : f32
    %14 = vector.broadcast %cst_7 : f32 to vector<8x128xf32>
    %15 = arith.maximumf %14, %13 : vector<8x128xf32>
    %16 = vector.broadcast %cst_8 : f32 to vector<8x128xf32>
    %17 = arith.minimumf %16, %15 : vector<8x128xf32>
    %c0_9 = arith.constant 0 : index
    %c0_10 = arith.constant 0 : index
    %18 = vector.load %arg4[%c0_9, %c0_10] : memref<8x128xf32, #tpu.memory_space<vmem>>, vector<8x128xf32>
    tpu.vector_store %arg4[%c0_9, %c0_10], %17 {strides = array<i32>} : memref<8x128xf32, #tpu.memory_space<vmem>>, vector<8x128xf32>,
    return
  }
  func.func @transform_0(%arg0: i32) -> (i32, i32) {
    %c0_i32 = arith.constant 0 : i32
    %c0_i32_0 = arith.constant 0 : i32
    return %arg0, %c0_i32 : i32, i32
  }
  func.func @transform_1(%arg0: i32) -> (i32, i32) {
    %c0_i32 = arith.constant 0 : i32
    %c0_i32_0 = arith.constant 0 : i32
    %c0_i32_1 = arith.constant 0 : i32
    return %c0_i32, %c0_i32_0 : i32, i32
  }
  func.func @transform_2(%arg0: i32) -> (i32, i32) {
    %c0_i32 = arith.constant 0 : i32
    %c0_i32_0 = arith.constant 0 : i32
    %c0_i32_1 = arith.constant 0 : i32
    return %c0_i32, %c0_i32_0 : i32, i32
  }
  func.func @transform_3(%arg0: i32) -> (i32, i32) {
    %c0_i32 = arith.constant 0 : i32
    %c0_i32_0 = arith.constant 0 : i32
    return %arg0, %c0_i32 : i32, i32
  }
}

</mosaic_0001>

<bundles_post_ra>
// kernel: tpu_custom_call.1
= control target key start
LH: loop header
LB: loop body
LE: loop exit
PB: predicated region body
PF: predicated region fallthrough
CT: control target
= control target key end

     0   :  { %8 = vsyncpa [#allocation3], 0  ;;  %s410_s0 = inlined_call_operand.hbm [shape: f32[2,128], index: 0, kind: input, shape index: {}]   ;;  %s411_s1 = inlined_call_operand.hbm [shape: f32[128,128], index: 1, kind: input, shape index: {}]   ;;  %s412_s2 = inlined_call_operand.vmem [shape: f32[1,128], index: 2, kind: input, shape index: {}]   ;;  %s413_s3 = inlined_call_operand.hbm [shape: f32[2,128], index: 3, kind: output, shape index: {}]  }
   0x1   :  { %9 = vsyncpa [#allocation6], 0 }
   0x2   :  { %10 = vsyncpa [#allocation4], 0 }
   0x3   :  { %15 = vsyncadd [#allocation3], 96  ;;  %s335_s12 = smov [#allocation2]   ;;  %s263_s16 = scalar_lea.hbm %s410_s0, 32 }
   0x4   :  { %s16_s13 = sshll.u32 %s335_s12, 4  ;;  %p264_p0 = scmp.ne.s32.totalorder %s410_s0, %s263_s16  ;;  %s17_s13 = int_to_ptr.vmem [resolvable:$true] %s16_s13 }
   0x5   :  { %p267_p1 = scmp.lt.u32.totalorder %s263_s16, %s410_s0 }
   0x7   :  { %p269_p2 = pnand %p267_p1, %p264_p0 }
   0x9   :  { %272 = shalt.err (!%p269_p2)
}
   0xa   :  { %s273_s21 = scalar_lea.vmem %s17_s13, 32  ;;  %s277_s22 = scalar_lea.vmem %s17_s13, 128 }
   0xb   :  { %p274_p3 = scmp.ne.s32.totalorder %s17_s13, %s273_s21  ;;  %p278_p4 = scmp.lt.s32.totalorder %s17_s13, %s17_s13 }
   0xc   :  { %p279_p5 = scmp.lt.s32.totalorder %s277_s22, %s273_s21 }
   0xe   :  { %p280_p6 = por %p279_p5, %p278_p4 }
  0x10   :  { %p281_p7 = pnand %p280_p6, %p274_p3 }
  0x12   :  { %284 = shalt.err (!%p281_p7)
}
  0x13   :  { %s336_s23 = smov 32   ;;  %s337_s24 = smov 2  }
  0x14   :  { %22 = dma.hbm_to_vmem [thread:$0]  %s410_s0, 32, %s17_s13, [#allocation3], %s336_s23, %s336_s23, %s337_s24  }
  0x15   :  { %s338_s27 = smov [#allocation5]   ;;  %s285_s4 = scalar_lea.hbm %s411_s1, 2048 }
  0x16   :  { %s28_s28 = sshll.u32 %s338_s27, 4  ;;  %p286_p8 = scmp.ne.s32.totalorder %s411_s1, %s285_s4  ;;  %s29_s28 = int_to_ptr.vmem [resolvable:$true] %s28_s28 }
  0x17   :  { %p289_p9 = scmp.lt.u32.totalorder %s285_s4, %s411_s1 }
  0x19   :  { %p291_p10 = pnand %p289_p9, %p286_p8 }
  0x1b   :  { %294 = shalt.err (!%p291_p10)
}
  0x1c   :  { %s295_s9 = scalar_lea.vmem %s29_s28, 2048  ;;  %p300_p12 = scmp.lt.s32.totalorder %s29_s28, %s29_s28 }
  0x1d   :  { %p296_p11 = scmp.ne.s32.totalorder %s29_s28, %s295_s9  ;;  %p301_p13 = scmp.lt.s32.totalorder %s295_s9, %s295_s9 }
  0x1f   :  { %p302_p0 = por %p301_p13, %p300_p12 }
  0x21   :  { %p303_p1 = pnand %p302_p0, %p296_p11 }
  0x23   :  { %306 = shalt.err (!%p303_p1)
}
  0x24   :  { %s339_s0 = smov 128   ;;  %s340_s10 = smov 8  }
  0x25   :  { %34 = dma.hbm_to_vmem [thread:$0]  %s411_s1, 2048, %s29_s28, [#allocation6], %s339_s0, %s339_s0, %s340_s10  }
  0x26   :  { %329 = dma.done.wait [#allocation3], 128  }
  0x27   :  { %330 = vsyncadd [#allocation3], 4294967168 }
  0x28   :  { %331 = dma.done.wait [#allocation6], 2048  }
  0x29   :  { %332 = vsyncadd [#allocation6], 4294965248  ;;  %v341_v0 = vmov 0.0|0.0   ;;  %vm342_vm0 = vmmov 0   ;;  %v343_v1 = vmov 0.0   ;;  %v44_v2 = vld [vmem:[#allocation5] sm:$0xff] }
  0x2a   :  { %225 = vmatprep.subr.bf16.mxu0 %v341_v0  ;;  %222 = vmatprep.mubr.msk.f32.mxu0 %vm342_vm0, %v343_v1  ;;  %v45_v3 = vld [vmem:[#allocation5 + $0x8] sm:$0xff]  ;;  %v46_v4 = vld [vmem:[#allocation5 + $0x10] sm:$0xff]  ;;  %v47_v6 = vld [vmem:[#allocation5 + $0x18] sm:$0xff] }
  0x2b   :  { %v226_v5 = vpack.c.bf16 %v45_v3, %v44_v2  ;;  %v229_v7 = vpack.c.bf16 %v47_v6, %v46_v4  ;;  %v48_v8 = vld [vmem:[#allocation5 + $0x20] sm:$0xff]  ;;  %v49_v9 = vld [vmem:[#allocation5 + $0x28] sm:$0xff]  ;;  %v50_v11 = vld [vmem:[#allocation5 + $0x30] sm:$0xff] }
  0x2c   :  { %v232_v10 = vpack.c.bf16 %v49_v9, %v48_v8  ;;  %v51_v12 = vld [vmem:[#allocation5 + $0x38] sm:$0xff]  ;;  %v52_v14 = vld [vmem:[#allocation5 + $0x40] sm:$0xff]  ;;  %v53_v15 = vld [vmem:[#allocation5 + $0x48] sm:$0xff] }
  0x2d   :  { %227 = vmatpush3.bf16.msra.mxu0 %v226_v5  ;;  %v235_v13 = vpack.c.bf16 %v51_v12, %v50_v11  ;;  %v238_v16 = vpack.c.bf16 %v53_v15, %v52_v14  ;;  %v54_v17 = vld [vmem:[#allocation5 + $0x50] sm:$0xff]  ;;  %v55_v18 = vld [vmem:[#allocation5 + $0x58] sm:$0xff]  ;;  %v56_v20 = vld [vmem:[#allocation5 + $0x60] sm:$0xff] }
  0x2e   :  { %228 = vmatprep.subr.bf16.mxu0 %v341_v0  ;;  %v241_v19 = vpack.c.bf16 %v55_v18, %v54_v17  ;;  %v57_v21 = vld [vmem:[#allocation5 + $0x68] sm:$0xff]  ;;  %v58_v23 = vld [vmem:[#allocation5 + $0x70] sm:$0xff]  ;;  %v59_v24 = vld [vmem:[#allocation5 + $0x78] sm:$0xff] }
  0x2f   :  { %v244_v22 = vpack.c.bf16 %v57_v21, %v56_v20  ;;  %v247_v25 = vpack.c.bf16 %v59_v24, %v58_v23  ;;  %v43_v26 = vld [vmem:[#allocation2] sm:$0xff] }
  0x30   :  { %v171_v27 = vld [vmem:[%s412_s2] ss:$0 sm:$0xff] }
  0x31   :  { %230 = vmatpush3.bf16.msra.mxu0 %v229_v7 }
  0x32   :  { %231 = vmatprep.subr.bf16.mxu0 %v341_v0 }
  0x35   :  { %233 = vmatpush3.bf16.msra.mxu0 %v232_v10 }
  0x36   :  { %234 = vmatprep.subr.bf16.mxu0 %v341_v0 }
  0x39   :  { %236 = vmatpush3.bf16.msra.mxu0 %v235_v13 }
  0x3a   :  { %237 = vmatprep.subr.bf16.mxu0 %v341_v0 }
  0x3d   :  { %239 = vmatpush3.bf16.msra.mxu0 %v238_v16 }
  0x3e   :  { %240 = vmatprep.subr.bf16.mxu0 %v341_v0 }
  0x41   :  { %242 = vmatpush3.bf16.msra.mxu0 %v241_v19 }
  0x42   :  { %243 = vmatprep.subr.bf16.mxu0 %v341_v0 }
  0x45   :  { %245 = vmatpush3.bf16.msra.mxu0 %v244_v22 }
  0x46   :  { %246 = vmatprep.subr.bf16.mxu0 %v341_v0 }
  0x49   :  { %248 = vmatpush3.bf16.msra.mxu0 %v247_v25 }
  0x4c   :  { %223 = vmatmul.mubr.f32.vlgmr.msra.gmra.mrb[0].mxu0 %v43_v26 }
 0x11f   :  { %v133_v28 = vpop.f32.mrb[0].mxu0 }
 0x120   :  { %v134_v29 = vadd.f32 %v171_v27, %v133_v28  ;;  %v224_v30 = vpop.f32.mrb[1].mxu0 }
 0x122   :  { %v137_v31 = vmul.f32 %v134_v29, %v134_v29 }
 0x124   :  { %138 = vadd.xlane.f32.xlu0 %v137_v31 }
 0x1b1   :  { %v139_v32 = vpop.xlane.xlu0 %138 }
 0x1b2   :  { %259 = vrsqrt.f32 %v139_v32  ;;  %vm142_vm1 = vcmp.eq.f32.partialorder %v139_v32, inf  ;;  %v145_v35 = vand.u32 2147483648, %v139_v32  ;;  %vm144_vm2 = vcmp.eq.f32.partialorder %v139_v32, 0.0 }
 0x1bc   :  { %v260_v33 = vpop.eup %259 }
 0x1bd   :  { %v141_v34 = vmul.f32 %v260_v33, %v139_v32 }
 0x1bf   :  { %v143_v36 = vsel %vm142_vm1, %v139_v32, %v141_v34 }
 0x1c0   :  { %v146_v37 = vsel %vm144_vm2, %v145_v35, %v143_v36 }
 0x1c1   :  { %v147_v38 = vadd.f32 1e-07, %v146_v37 }
 0x1c3   :  { %261 = vrcp.f32 %v147_v38 }
 0x1cd   :  { %v262_v39 = vpop.eup %261 }
 0x1ce   :  { %v149_v40 = vmul.f32 %v262_v39, %v134_v29 }
 0x1d0   :  { %v172_v41 = vclamps-f32 %v149_v40, 1000.0 }
 0x1d2   :  { %152 = vst [vmem:[#allocation7] sm:$0xff] %v172_v41 }
 0x1d3   :  { %157 = vsyncadd [#allocation4], 96  ;;  %s344_s2 = smov [#allocation7]  }
 0x1d4   :  { %s158_s14 = sshll.u32 %s344_s2, 4  ;;  %s159_s14 = int_to_ptr.vmem [resolvable:$true] %s158_s14 }
 0x1d5   :  { %s307_s15 = scalar_lea.vmem %s159_s14, 32  ;;  %s311_s16 = scalar_lea.vmem %s159_s14, 128 }
 0x1d6   :  { %p308_p2 = scmp.ne.s32.totalorder %s159_s14, %s307_s15  ;;  %p312_p3 = scmp.lt.s32.totalorder %s159_s14, %s159_s14 }
 0x1d7   :  { %p313_p4 = scmp.lt.s32.totalorder %s311_s16, %s307_s15 }
 0x1d9   :  { %p314_p5 = por %p313_p4, %p312_p3 }
 0x1db   :  { %p315_p6 = pnand %p314_p5, %p308_p2 }
 0x1dd   :  { %318 = shalt.err (!%p315_p6)
}
 0x1de   :  { %s319_s19 = scalar_lea.hbm %s413_s3, 32 }
 0x1df   :  { %p320_p7 = scmp.ne.s32.totalorder %s413_s3, %s319_s19  ;;  %p323_p8 = scmp.lt.u32.totalorder %s319_s19, %s413_s3 }
 0x1e1   :  { %p325_p9 = pnand %p323_p8, %p320_p7 }
 0x1e3   :  { %328 = shalt.err (!%p325_p9)
}
 0x1e4   :  { %164 = dma.vmem_to_hbm [thread:$0]  %s159_s14, 32, %s413_s3, [#allocation4], %s336_s23, %s336_s23, %s337_s24  }
 0x1e5   :  { %333 = dma.done.wait [#allocation4], 128  }
 0x1e6   :  { %334 = vsyncadd [#allocation4], 4294967168 }
 0x1e7   :  { %168 = vsyncpa [#allocation3], 1 }
 0x1e8   :  { %169 = vsyncpa [#allocation6], 1 }
 0x1e9   :  { %170 = vsyncpa [#allocation4], 1 }

</bundles_post_ra>
